<compile_context>
chip_gen: v6e
topology: v6e:2x2x1
jax: 0.10.0
libtpu: 0.0.40
codegen_flags: <defaults>
</compile_context>

<pallas_src>
import jax
import jax.numpy as jnp
from jax.experimental import pallas as pl
from jax.experimental.pallas import tpu as pltpu


def _h_swish_kernel(x_ref, o_ref):
    x = x_ref[...]
    dt = x.dtype
    three = jnp.asarray(3, dt)
    zero = jnp.asarray(0, dt)
    six = jnp.asarray(6, dt)
    inv_six = jnp.asarray(1.0 / 6.0, dt)
    # h_swish(x) = x * ReLU6(x + 3) / 6 = x * clip(x + 3, 0, 6) * (1/6)
    o_ref[...] = (x * (jnp.clip(x + three, zero, six) * inv_six)).astype(o_ref.dtype)


# Lane-width candidates (widest first). Wider slab => lane-dense, bigger DMA grain.
_LANE_CANDIDATES = (4096, 2048, 1024, 512, 256, 128)
# ~8 MiB per block: 2 arrays x 2 buffers x 8 MiB = 32 MiB of VMEM buffers.
_TARGET_BLOCK_BYTES = 8 * 1024 * 1024
_VMEM_LIMIT_BYTES = 48 * 1024 * 1024  # headroom under v7x's 64 MiB physical VMEM


def _h_swish_2d(x2d: jax.Array) -> jax.Array:
    """Run the Pallas kernel on a (rows, width) lane-dense slab."""
    rows, width = x2d.shape
    dtype = x2d.dtype
    itemsize = jnp.dtype(dtype).itemsize

    # Rows per block: target ~_TARGET_BLOCK_BYTES, rounded down to a multiple
    # of 8 (sublane constraint), at least 8.
    tr = (_TARGET_BLOCK_BYTES // (width * itemsize)) // 8 * 8
    tr = max(8, tr)

    if rows <= 8:
        # Tiny slab: a single full-array block (always a legal block shape).
        tr = rows
        grid = (1,)
    else:
        # Ensure at least 2 blocks so both v7x TensorCores get work; ragged
        # last block is masked by Pallas (no divisor search needed).
        half = (pl.cdiv(rows, 2) // 8) * 8
        tr = max(8, min(tr, half if half > 0 else 8))
        grid = (pl.cdiv(rows, tr),)

    return pl.pallas_call(
        _h_swish_kernel,
        out_shape=jax.ShapeDtypeStruct((rows, width), dtype),
        grid_spec=pltpu.PrefetchScalarGridSpec(
            num_scalar_prefetch=0,
            grid=grid,
            in_specs=[pl.BlockSpec((tr, width), lambda i: (i, 0))],
            out_specs=pl.BlockSpec((tr, width), lambda i: (i, 0)),
        ),
        compiler_params=pltpu.CompilerParams(
            dimension_semantics=("parallel",),
            vmem_limit_bytes=_VMEM_LIMIT_BYTES,
        ),
    )(x2d)


def _h_swish_jnp(x: jax.Array) -> jax.Array:
    """Plain-jnp hard-swish, used only for the <128-element tail."""
    dt = x.dtype
    return x * (
        jnp.clip(x + jnp.asarray(3, dt), jnp.asarray(0, dt), jnp.asarray(6, dt))
        * jnp.asarray(1.0 / 6.0, dt)
    )


def h_swish(x: jax.Array) -> jax.Array:
    """Elementwise hard-swish. Accepts any shape (e.g. NCHW) and dtype f32/bf16."""
    orig_shape = x.shape
    dtype = x.dtype
    n = x.size
    if n == 0:
        return x

    # Pick the widest lane width that divides n exactly (no padding / copies).
    width = None
    for w in _LANE_CANDIDATES:
        if n % w == 0:
            width = w
            break

    if width is not None:
        out2d = _h_swish_2d(x.reshape(n // width, width))
        return out2d.reshape(orig_shape)

    # Rare fallback: n is not a multiple of 128. Run the kernel on the
    # 128-aligned prefix and compute the <128-element tail with plain jnp
    # (avoids full-array pad + full-output slice passes over HBM).
    x_flat = x.reshape(-1)
    n_aligned = (n // 128) * 128

    if n_aligned == 0:
        # Tiny input (< 128 elements): one minimally padded (1, 128) block.
        pad = 128 - n
        xp = jnp.concatenate([x_flat, jnp.zeros((pad,), dtype=dtype)])
        out = _h_swish_2d(xp.reshape(1, 128)).reshape(-1)[:n]
        return out.reshape(orig_shape)

    prefix_out = _h_swish_2d(x_flat[:n_aligned].reshape(n_aligned // 128, 128)).reshape(-1)
    tail_out = _h_swish_jnp(x_flat[n_aligned:])
    return jnp.concatenate([prefix_out, tail_out]).reshape(orig_shape)


def _ref(x):
    return x * (jnp.clip(x + 3.0, 0.0, 6.0) / 6.0)


if __name__ == "__main__":
    key = jax.random.PRNGKey(0)

    # Primary test: NCHW, small shape from the module spec.
    x = jax.random.normal(key, (2, 4, 16, 16), dtype=jnp.float32) * 4.0
    y = jax.block_until_ready(h_swish(x))
    assert y.shape == x.shape and y.dtype == x.dtype
    assert jnp.allclose(y, _ref(x), atol=1e-5, rtol=1e-5), "mismatch (f32 NCHW)"

    # Multi-block path with ragged last block (exercises >=2-block grid).
    x2 = jax.random.normal(jax.random.PRNGKey(1), (2, 3, 40, 56), dtype=jnp.float32) * 4.0
    y2 = jax.block_until_ready(h_swish(x2))
    assert y2.shape == x2.shape and y2.dtype == x2.dtype
    assert jnp.allclose(y2, _ref(x2), atol=1e-5, rtol=1e-5), "mismatch (ragged rows)"

    # Fallback path: size not divisible by 128 (prefix kernel + jnp tail).
    x3 = jax.random.normal(jax.random.PRNGKey(2), (2, 3, 5, 17), dtype=jnp.float32) * 4.0
    y3 = jax.block_until_ready(h_swish(x3))
    assert y3.shape == x3.shape and y3.dtype == x3.dtype
    assert jnp.allclose(y3, _ref(x3), atol=1e-5, rtol=1e-5), "mismatch (non-128 fallback)"

    # Tiny fallback path: fewer than 128 elements total.
    x4 = jax.random.normal(jax.random.PRNGKey(3), (3, 5, 7), dtype=jnp.float32) * 4.0
    y4 = jax.block_until_ready(h_swish(x4))
    assert y4.shape == x4.shape and y4.dtype == x4.dtype
    assert jnp.allclose(y4, _ref(x4), atol=1e-5, rtol=1e-5), "mismatch (tiny fallback)"

    print("KERNEL_OK")
</pallas_src>

<mosaic_0001>
module attributes {stable_mosaic.version = 11 : i64} {
  func.func @_h_swish_kernel(%arg0: i32, %arg1: memref<1x2048xf32, #tpu.memory_space<vmem>>, %arg2: memref<1x2048xf32, #tpu.memory_space<vmem>>) attributes {dimension_semantics = [#tpu.dimension_semantics<parallel>], iteration_bounds = array<i64: 1>, scalar_prefetch = 0 : i64, scratch_operands = 0 : i64, tpu.core_type = #tpu.core_type<tc>, window_params = [{transform_indices = @transform_0, window_bounds = array<i64: 1, 2048>}, {transform_indices = @transform_1, window_bounds = array<i64: 1, 2048>}]} {
    %c0 = arith.constant 0 : index
    %c0_0 = arith.constant 0 : index
    %0 = vector.load %arg1[%c0, %c0_0] : memref<1x2048xf32, #tpu.memory_space<vmem>>, vector<1x2048xf32>
    %cst = arith.constant 3.000000e+00 : f32
    %1 = vector.broadcast %cst : f32 to vector<1x2048xf32>
    %2 = arith.addf %0, %1 : vector<1x2048xf32>
    %cst_1 = arith.constant 0.000000e+00 : f32
    %cst_2 = arith.constant 6.000000e+00 : f32
    %3 = vector.broadcast %cst_1 : f32 to vector<1x2048xf32>
    %4 = arith.maximumf %3, %2 : vector<1x2048xf32>
    %5 = vector.broadcast %cst_2 : f32 to vector<1x2048xf32>
    %6 = arith.minimumf %5, %4 : vector<1x2048xf32>
    %cst_3 = arith.constant 0.166666672 : f32
    %7 = vector.broadcast %cst_3 : f32 to vector<1x2048xf32>
    %8 = arith.mulf %6, %7 : vector<1x2048xf32>
    %9 = arith.mulf %0, %8 : vector<1x2048xf32>
    %c0_4 = arith.constant 0 : index
    %c0_5 = arith.constant 0 : index
    %10 = vector.load %arg2[%c0_4, %c0_5] : memref<1x2048xf32, #tpu.memory_space<vmem>>, vector<1x2048xf32>
    tpu.vector_store %arg2[%c0_4, %c0_5], %9 {strides = array<i32>} : memref<1x2048xf32, #tpu.memory_space<vmem>>, vector<1x2048xf32>,
    return
  }
  func.func @transform_0(%arg0: i32) -> (i32, i32) {
    %c0_i32 = arith.constant 0 : i32
    %c0_i32_0 = arith.constant 0 : i32
    return %arg0, %c0_i32 : i32, i32
  }
  func.func @transform_1(%arg0: i32) -> (i32, i32) {
    %c0_i32 = arith.constant 0 : i32
    %c0_i32_0 = arith.constant 0 : i32
    return %arg0, %c0_i32 : i32, i32
  }
}

</mosaic_0001>

<bundles_post_ra>
// kernel: tpu_custom_call.1
= control target key start
LH: loop header
LB: loop body
LE: loop exit
PB: predicated region body
PF: predicated region fallthrough
CT: control target
= control target key end

     0   :  { %6 = vsyncpa [#allocation3], 0  ;;  %s114_s0 = inlined_call_operand.hbm [shape: f32[1,2048], index: 0, kind: input, shape index: {}]   ;;  %s115_s1 = inlined_call_operand.hbm [shape: f32[1,2048], index: 1, kind: output, shape index: {}]  }
   0x1   :  { %7 = vsyncpa [#allocation4], 0  ;;  %s96_s6 = smov [#allocation2]  }
   0x2   :  { %s14_s7 = sshll.u32 %s96_s6, 4  ;;  %s15_s7 = int_to_ptr.vmem [resolvable:$true] %s14_s7 }
   0x3   :  { %s60_s8 = scalar_lea.vmem %s15_s7, 256  ;;  %p65_p1 = scmp.lt.s32.totalorder %s15_s7, %s15_s7 }
   0x4   :  { %p61_p0 = scmp.ne.s32.totalorder %s15_s7, %s60_s8  ;;  %p66_p2 = scmp.lt.s32.totalorder %s60_s8, %s60_s8 }
   0x6   :  { %p67_p3 = por %p66_p2, %p65_p1 }
   0x8   :  { %p68_p4 = pnand %p67_p3, %p61_p0 }
   0xa   :  { %71 = shalt.err (!%p68_p4)
}
   0xb   :  { %17 = dma.hbm_to_vmem [thread:$0]  %s114_s0, 256, %s15_s7, [#allocation3]  }
   0xc   :  { %92 = dma.done.wait [#allocation3], 256  }
   0xd   :  { %93 = vsyncadd [#allocation3], 4294967040  ;;  %v21_v0 = vld [vmem:[#allocation2] sm:$0xff]  ;;  %v22_v1 = vld [vmem:[#allocation2 + $0x8] sm:$0xff]  ;;  %s97_s11 = smov [#allocation5]  }
   0xe   :  { %v23_v2 = vadd.f32 3.0, %v21_v0  ;;  %v24_v3 = vadd.f32 3.0, %v22_v1  ;;  %s41_s12 = sshll.u32 %s97_s11, 4  ;;  %s42_s12 = int_to_ptr.vmem [resolvable:$true] %s41_s12 }
   0xf   :  { %s72_s0 = scalar_lea.vmem %s42_s12, 256  ;;  %p77_p6 = scmp.lt.s32.totalorder %s42_s12, %s42_s12 }
  0x10   :  { %v25_v4 = vmax.f32 %v23_v2, 0.0  ;;  %v26_v5 = vmax.f32 %v24_v3, 0.0  ;;  %p73_p5 = scmp.ne.s32.totalorder %s42_s12, %s72_s0  ;;  %p78_p7 = scmp.lt.s32.totalorder %s72_s0, %s72_s0 }
  0x12   :  { %v27_v6 = vmin.f32 %v25_v4, 6.0  ;;  %v28_v7 = vmin.f32 %v26_v5, 6.0  ;;  %p79_p8 = por %p78_p7, %p77_p6 }
  0x14   :  { %v29_v8 = vmul.f32 0.16666667, %v27_v6  ;;  %v30_v9 = vmul.f32 0.16666667, %v28_v7  ;;  %p80_p9 = pnand %p79_p8, %p73_p5 }
  0x16   :  { %v31_v10 = vmul.f32 %v29_v8, %v21_v0  ;;  %v32_v11 = vmul.f32 %v30_v9, %v22_v1 }
  0x18   :  { %33 = vst [vmem:[#allocation5] sm:$0xff] %v31_v10  ;;  %34 = vst [vmem:[#allocation5 + $0x8] sm:$0xff] %v32_v11 }
  0x19   :  { %83 = shalt.err (!%p80_p9)
}
  0x1a   :  { %44 = dma.vmem_to_hbm [thread:$0]  %s42_s12, 256, %s115_s1, [#allocation4]  }
  0x1b   :  { %94 = dma.done.wait [#allocation4], 256  }
  0x1c   :  { %95 = vsyncadd [#allocation4], 4294967040 }
  0x1d   :  { %48 = vsyncpa [#allocation3], 1 }
  0x1e   :  { %49 = vsyncpa [#allocation4], 1 }

</bundles_post_ra>
